<compile_context>
chip_gen: v5e
topology: v5e:2x2
jax: 0.10.0
libtpu: 0.0.40
codegen_flags: <defaults>
</compile_context>

<pallas_src>
import functools

import jax
import jax.numpy as jnp
from jax import lax
from jax.experimental import pallas as pl
from jax.experimental.pallas import tpu as pltpu


def _round_up(x, m):
    return ((x + m - 1) // m) * m


def concat_attention_kernel(n_valid, hidden_chunk,
                            v_ref, qh_ref, w1v_ref, w2_ref, out_ref):
    # v_ref  : (TB, Np, Dvp)  bf16  zero-padded visual features
    # qh_ref : (TB, Hp)       f32   precomputed q @ W1q + b1
    # w1v_ref: (Dvp, Hp)      bf16  v-half of the first (weight-normed) linear
    # w2_ref : (1, Hp)        f32   second (weight-normed) linear as a row
    # out_ref: (TB, Nout)     f32   lane-dense softmax over the object axis
    TB, Np, Dvp = v_ref.shape
    Hp = qh_ref.shape[-1]
    Nout = out_ref.shape[-1]

    # One MXU matmul per hidden chunk with M = TB * Np rows.  Np % 16 == 0
    # keeps this bf16 reshape a pure layout no-op (stacked (16, 128) tiles).
    v2d = v_ref[...].reshape(TB * Np, Dvp)

    logits = jnp.zeros((TB, Np), jnp.float32)
    for h0 in range(0, Hp, hidden_chunk):          # static, usually 1 chunk
        hc = min(hidden_chunk, Hp - h0)
        h = jnp.dot(v2d, w1v_ref[:, h0:h0 + hc],
                    preferred_element_type=jnp.float32)          # [TB*Np, hc] f32
        h = h.reshape(TB, Np, hc) + qh_ref[:, h0:h0 + hc][:, None, :]
        h = jnp.maximum(h, 0.0)                                   # ReLU (f32 VPU)
        # Second linear has a single output column -> VPU multiply + XLU lane
        # reduction; keeps the MXU free and the result lane-dense.
        logits = logits + jnp.sum(h * w2_ref[:, h0:h0 + hc], axis=-1)

    # Numerically-stable masked softmax over the valid objects.  Padded
    # object columns get a large finite negative (no inf arithmetic needed).
    if Np != n_valid:  # static branch
        col = lax.broadcasted_iota(jnp.int32, (TB, Np), 1)
        logits = jnp.where(col < n_valid, logits, jnp.float32(-1e30))

    m = jnp.max(logits, axis=-1, keepdims=True)
    e = jnp.exp(logits - m)
    denom = jnp.sum(e, axis=-1, keepdims=True)
    probs = e * pl.reciprocal(denom, approx=False)   # exact normalization

    # Lane-dense (TB, Nout) output block: zero-fill the full width once, then
    # drop the Np computed columns in.  The HBM writeback is the full
    # lane-dense block either way (no narrow masked output stream).
    if Nout > Np:
        out_ref[...] = jnp.zeros((TB, Nout), jnp.float32)
        out_ref[:, :Np] = probs
    else:
        out_ref[...] = probs


def concat_attention(v, q, w1v, w1q, b1, w2, b2=None):
    """v: [B, N, v_dim], q: [B, q_dim] -> attention weights [B, N, 1].

    w1v: [v_dim, H], w1q: [q_dim, H], b1: [H], w2: [H].
    b2 is accepted for API parity but unused: softmax is shift-invariant.
    """
    B, N, v_dim = v.shape
    H = w1v.shape[1]

    # Hoist the q path: one well-shaped XLA matmul over all B (kept f32).
    qh = (q.astype(jnp.float32) @ w1q.astype(jnp.float32)
          + b1.astype(jnp.float32).reshape(1, H))                  # [B, H]

    # TPU-friendly padding.
    Dvp = _round_up(v_dim, 128)            # lane axis of v / sublanes of W1v
    Hp = _round_up(H, 128)                 # hidden lane axis
    Np = _round_up(N, 16)                  # bf16 sublane packing -> x16
    Nout = max(128, _round_up(N, 128))     # lane-dense output width

    # ---- VMEM budgeting / batch-block (tb) sizing ---------------------------
    try:
        vmem_bytes = int(pltpu.get_tpu_info().vmem_capacity_bytes)
    except Exception:
        vmem_bytes = 64 << 20              # conservative (v7x-class) fallback
    vmem_limit = max(32 << 20, min((vmem_bytes * 7) // 8, 112 << 20))
    vmem_budget = (vmem_limit * 2) // 3    # headroom for compiler temporaries

    hidden_chunk = Hp if Hp < 1024 else 512
    fixed_bytes = 2 * (Dvp * Hp * 2 + Hp * 4)      # double-buffered W1v(bf16)+W2
    per_tb_bytes = (2 * Np * Dvp * 2               # v block, double-buffered bf16
                    + 2 * Hp * 4                   # qh block, double-buffered f32
                    + 2 * Nout * 4                 # out block, double-buffered f32
                    + Np * hidden_chunk * 4)       # live f32 intermediate h
    tb_cap = max(1, (vmem_budget - fixed_bytes) // per_tb_bytes)

    target_rows = 1024                             # feed the MXU >=512 rows/step
    tb = min(max(1, -(-target_rows // Np)), tb_cap)
    if tb >= B:
        if B % 16 == 0 and B >= 16:
            tb, Bp = B // 2, B      # >= 2 tile-legal steps -> both v7x TCs busy
        else:
            tb, Bp = B, B           # single step covering the whole small batch
    else:
        tb = max(8, (tb // 8) * 8)  # round DOWN under the VMEM cap (tile-legal)
        if tb >= B:
            tb, Bp = B, B
        else:
            Bp = _round_up(B, tb)   # >= 2 grid steps

    # Single fused convert(+pad) producer for the MXU inputs; skipped entirely
    # when the input is already bf16 and tile-aligned (steady-state case).
    v_bf = v if v.dtype == jnp.bfloat16 else v.astype(jnp.bfloat16)
    if (Bp, Np, Dvp) != (B, N, v_dim):
        v_bf = jnp.pad(v_bf, ((0, Bp - B), (0, Np - N), (0, Dvp - v_dim)))

    w1v_bf = w1v if w1v.dtype == jnp.bfloat16 else w1v.astype(jnp.bfloat16)
    if (Dvp, Hp) != (v_dim, H):
        w1v_bf = jnp.pad(w1v_bf, ((0, Dvp - v_dim), (0, Hp - H)))

    qh_p = qh if (Bp, Hp) == (B, H) else jnp.pad(qh, ((0, Bp - B), (0, Hp - H)))
    w2_row = w2.astype(jnp.float32).reshape(1, H)
    w2_p = w2_row if Hp == H else jnp.pad(w2_row, ((0, 0), (0, Hp - H)))

    kernel = functools.partial(concat_attention_kernel, N, hidden_chunk)
    out = pl.pallas_call(
        kernel,
        out_shape=jax.ShapeDtypeStruct((Bp, Nout), jnp.float32),
        grid_spec=pltpu.PrefetchScalarGridSpec(
            num_scalar_prefetch=0,
            grid=(Bp // tb,),
            in_specs=[
                pl.BlockSpec((tb, Np, Dvp), lambda i: (i, 0, 0)),   # v (bf16)
                pl.BlockSpec((tb, Hp),      lambda i: (i, 0)),      # qh = q@W1q + b1
                pl.BlockSpec((Dvp, Hp),     lambda i: (0, 0)),      # W1 (v half, bf16)
                pl.BlockSpec((1, Hp),       lambda i: (0, 0)),      # W2 row
            ],
            out_specs=pl.BlockSpec((tb, Nout), lambda i: (i, 0)),
        ),
        compiler_params=pltpu.CompilerParams(
            dimension_semantics=("parallel",),
            vmem_limit_bytes=int(vmem_limit)),
    )(v_bf, qh_p, w1v_bf, w2_p)

    # Lane-dense (Bp, Nout) -> module's [B, N, 1]; wrapper slice/reshape is free.
    return out[:B, :N].reshape(B, N, 1)


def make_params(key, v_dim, q_dim, hidden):
    """Deterministic params mirroring the module.
    weight_norm(dim=None): W_eff = g * W / ||W||_F with scalar g."""
    k1, k2, k3, k4, k5, k6 = jax.random.split(key, 6)
    in1 = v_dim + q_dim

    W1 = jax.random.normal(k1, (hidden, in1), jnp.float32) * 0.1
    g1 = jax.random.uniform(k2, (), jnp.float32, 0.5, 1.5)
    b1 = jax.random.normal(k3, (hidden,), jnp.float32) * 0.1

    W2 = jax.random.normal(k4, (1, hidden), jnp.float32) * 0.1
    g2 = jax.random.uniform(k5, (), jnp.float32, 0.5, 1.5)
    b2 = jax.random.normal(k6, (1,), jnp.float32) * 0.1

    W1_eff = g1 * W1 / jnp.linalg.norm(W1)   # [H, v_dim+q_dim]
    W2_eff = g2 * W2 / jnp.linalg.norm(W2)   # [1, H]

    w1v = W1_eff[:, :v_dim].T                # [v_dim, H]
    w1q = W1_eff[:, v_dim:].T                # [q_dim, H]
    w2 = W2_eff.reshape(hidden)              # [H]
    return w1v, w1q, b1, w2, b2


def reference(v, q, w1v, w1q, b1, w2, b2):
    """Plain-JAX f32 reference (includes b2; the kernel drops it since softmax
    is shift-invariant, so results must still match)."""
    h = jnp.einsum("bnd,dh->bnh", v, w1v) + (q @ w1q)[:, None, :] + b1
    h = jnp.maximum(h, 0.0)
    logits = jnp.einsum("bnh,h->bn", h, w2)[..., None] + b2[0]
    return jax.nn.softmax(logits, axis=1)


if __name__ == "__main__":
    B, N, v_dim, q_dim, hidden = 2, 8, 16, 16, 32

    key = jax.random.PRNGKey(0)
    kv, kq, kp = jax.random.split(key, 3)
    v = jax.random.normal(kv, (B, N, v_dim), jnp.float32)
    q = jax.random.normal(kq, (B, q_dim), jnp.float32)

    w1v, w1q, b1, w2, b2 = make_params(kp, v_dim, q_dim, hidden)

    out = jax.block_until_ready(concat_attention(v, q, w1v, w1q, b1, w2, b2))
    ref = reference(v, q, w1v, w1q, b1, w2, b2)

    assert out.shape == (B, N, 1)
    # bf16 MXU inputs with f32 accumulation -> slightly looser tolerance.
    assert jnp.allclose(out, ref, atol=2e-3, rtol=2e-3)
    assert jnp.allclose(jnp.sum(out, axis=1), 1.0, atol=1e-3)

    print("KERNEL_OK")
</pallas_src>

<mosaic_0001>
module attributes {stable_mosaic.version = 11 : i64} {
  func.func @concat_attention_kernel(%arg0: i32, %arg1: memref<2x16x128xbf16, #tpu.memory_space<vmem>>, %arg2: memref<2x128xf32, #tpu.memory_space<vmem>>, %arg3: memref<128x128xbf16, #tpu.memory_space<vmem>>, %arg4: memref<1x128xf32, #tpu.memory_space<vmem>>, %arg5: memref<2x128xf32, #tpu.memory_space<vmem>>) attributes {dimension_semantics = [#tpu.dimension_semantics<parallel>], iteration_bounds = array<i64: 1>, scalar_prefetch = 0 : i64, scratch_operands = 0 : i64, tpu.core_type = #tpu.core_type<tc>, window_params = [{transform_indices = @transform_0, window_bounds = array<i64: 2, 16, 128>}, {transform_indices = @transform_1, window_bounds = array<i64: 2, 128>}, {pipeline_mode = #tpu.pipeline_mode<synchronous>, transform_indices = @transform_2, window_bounds = array<i64: 128, 128>}, {pipeline_mode = #tpu.pipeline_mode<synchronous>, transform_indices = @transform_3, window_bounds = array<i64: 1, 128>}, {transform_indices = @transform_4, window_bounds = array<i64: 2, 128>}]} {
    %c0 = arith.constant 0 : index
    %c0_0 = arith.constant 0 : index
    %c0_1 = arith.constant 0 : index
    %0 = vector.load %arg1[%c0, %c0_0, %c0_1] : memref<2x16x128xbf16, #tpu.memory_space<vmem>>, vector<2x16x128xbf16>
    %1 = vector.shape_cast %0 : vector<2x16x128xbf16> to vector<32x128xbf16>
    %cst = arith.constant 0.000000e+00 : f32
    %2 = vector.broadcast %cst : f32 to vector<2x16xf32>
    %c0_2 = arith.constant 0 : index
    %c0_3 = arith.constant 0 : index
    %3 = vector.load %arg3[%c0_2, %c0_3] : memref<128x128xbf16, #tpu.memory_space<vmem>>, vector<128x128xbf16>
    %cst_4 = arith.constant dense<0.000000e+00> : vector<32x128xf32>
    %4 = tpu.matmul %1, %3, %cst_4 {dimension_numbers = #tpu.dot_dimension_numbers<[1], [0], [0], [1], [0, 0, 1, 1], [], []>} : vector<32x128xbf16>, vector<128x128xbf16>, vector<32x128xf32> -> vector<32x128xf32>
    %5 = vector.shape_cast %4 : vector<32x128xf32> to vector<2x16x128xf32>
    %c0_5 = arith.constant 0 : index
    %c0_6 = arith.constant 0 : index
    %6 = vector.load %arg2[%c0_5, %c0_6] : memref<2x128xf32, #tpu.memory_space<vmem>>, vector<2x128xf32>
    %7 = vector.shape_cast %6 : vector<2x128xf32> to vector<2x1x128xf32>
    %8 = vector.broadcast %7 : vector<2x1x128xf32> to vector<2x16x128xf32>
    %9 = arith.addf %5, %8 : vector<2x16x128xf32>
    %cst_7 = arith.constant 0.000000e+00 : f32
    %10 = vector.broadcast %cst_7 : f32 to vector<2x16x128xf32>
    %11 = arith.maximumf %9, %10 : vector<2x16x128xf32>
    %c0_8 = arith.constant 0 : index
    %c0_9 = arith.constant 0 : index
    %12 = vector.load %arg4[%c0_8, %c0_9] : memref<1x128xf32, #tpu.memory_space<vmem>>, vector<1x128xf32>
    %13 = vector.shape_cast %12 : vector<1x128xf32> to vector<1x1x128xf32>
    %14 = vector.broadcast %13 : vector<1x1x128xf32> to vector<2x16x128xf32>
    %15 = arith.mulf %11, %14 : vector<2x16x128xf32>
    %cst_10 = arith.constant dense<0.000000e+00> : vector<2x16xf32>
    %16 = vector.multi_reduction <add>, %15, %cst_10 [2] : vector<2x16x128xf32> to vector<2x16xf32>
    %17 = arith.addf %2, %16 : vector<2x16xf32>
    %18 = tpu.iota {dimensions = array<i32: 1>} : vector<2x16xi32>
    %c8_i32 = arith.constant 8 : i32
    %19 = vector.broadcast %c8_i32 : i32 to vector<2x16xi32>
    %20 = arith.cmpi slt, %18, %19 : vector<2x16xi32>
    %cst_11 = arith.constant -1.000000e+30 : f32
    %21 = vector.broadcast %cst_11 : f32 to vector<2x16xf32>
    %22 = arith.select %20, %17, %21 : vector<2x16xi1>, vector<2x16xf32>
    %cst_12 = arith.constant dense<0xFF800000> : vector<2xf32>
    %23 = vector.multi_reduction <maximumf>, %22, %cst_12 [1] : vector<2x16xf32> to vector<2xf32>
    %24 = vector.shape_cast %23 : vector<2xf32> to vector<2x1xf32>
    %25 = vector.broadcast %24 : vector<2x1xf32> to vector<2x16xf32>
    %26 = arith.subf %22, %25 : vector<2x16xf32>
    %27 = math.exp %26 : vector<2x16xf32>
    %cst_13 = arith.constant dense<0.000000e+00> : vector<2xf32>
    %28 = vector.multi_reduction <add>, %27, %cst_13 [1] : vector<2x16xf32> to vector<2xf32>
    %29 = vector.shape_cast %28 : vector<2xf32> to vector<2x1xf32>
    %30 = tpu.reciprocal %29 : vector<2x1xf32> -> vector<2x1xf32>
    %31 = vector.broadcast %30 : vector<2x1xf32> to vector<2x16xf32>
    %32 = arith.mulf %27, %31 : vector<2x16xf32>
    %cst_14 = arith.constant 0.000000e+00 : f32
    %33 = vector.broadcast %cst_14 : f32 to vector<2x128xf32>
    %c0_15 = arith.constant 0 : index
    %c0_16 = arith.constant 0 : index
    %34 = vector.load %arg5[%c0_15, %c0_16] : memref<2x128xf32, #tpu.memory_space<vmem>>, vector<2x128xf32>
    tpu.vector_store %arg5[%c0_15, %c0_16], %33 {strides = array<i32>} : memref<2x128xf32, #tpu.memory_space<vmem>>, vector<2x128xf32>,
    %c0_17 = arith.constant 0 : index
    %c0_18 = arith.constant 0 : index
    %35 = vector.load %arg5[%c0_17, %c0_18] : memref<2x128xf32, #tpu.memory_space<vmem>>, vector<2x16xf32>
    tpu.vector_store %arg5[%c0_17, %c0_18], %32 {strides = array<i32>} : memref<2x128xf32, #tpu.memory_space<vmem>>, vector<2x16xf32>,
    return
  }
  func.func @transform_0(%arg0: i32) -> (i32, i32, i32) {
    %c0_i32 = arith.constant 0 : i32
    %c0_i32_0 = arith.constant 0 : i32
    %c0_i32_1 = arith.constant 0 : i32
    return %arg0, %c0_i32, %c0_i32_0 : i32, i32, i32
  }
  func.func @transform_1(%arg0: i32) -> (i32, i32) {
    %c0_i32 = arith.constant 0 : i32
    %c0_i32_0 = arith.constant 0 : i32
    return %arg0, %c0_i32 : i32, i32
  }
  func.func @transform_2(%arg0: i32) -> (i32, i32) {
    %c0_i32 = arith.constant 0 : i32
    %c0_i32_0 = arith.constant 0 : i32
    %c0_i32_1 = arith.constant 0 : i32
    return %c0_i32, %c0_i32_0 : i32, i32
  }
  func.func @transform_3(%arg0: i32) -> (i32, i32) {
    %c0_i32 = arith.constant 0 : i32
    %c0_i32_0 = arith.constant 0 : i32
    %c0_i32_1 = arith.constant 0 : i32
    return %c0_i32, %c0_i32_0 : i32, i32
  }
  func.func @transform_4(%arg0: i32) -> (i32, i32) {
    %c0_i32 = arith.constant 0 : i32
    %c0_i32_0 = arith.constant 0 : i32
    return %arg0, %c0_i32 : i32, i32
  }
}

</mosaic_0001>

<bundles_post_ra>
// kernel: tpu_custom_call.1
= control target key start
LH: loop header
LB: loop body
LE: loop exit
PB: predicated region body
PF: predicated region fallthrough
CT: control target
= control target key end

     0   :  { %9 = vsyncpa [#allocation3], 0  ;;  %s483_s0 = inlined_call_operand.hbm [shape: bf16[2,16,128], index: 0, kind: input, shape index: {}]   ;;  %s484_s1 = inlined_call_operand.hbm [shape: f32[2,128], index: 1, kind: input, shape index: {}]   ;;  %s485_s2 = inlined_call_operand.hbm [shape: bf16[128,128], index: 2, kind: input, shape index: {}]   ;;  %s486_s3 = inlined_call_operand.vmem [shape: f32[1,128], index: 3, kind: input, shape index: {}]   ;;  %s487_s4 = inlined_call_operand.hbm [shape: f32[2,128], index: 4, kind: output, shape index: {}]  }
   0x1   :  { %10 = vsyncpa [#allocation6], 0  ;;  %s30_s17 = sshll.u32 %s484_s1, 4  ;;  %s31_s17 = int_to_ptr.hbm [resolvable:$true] %s30_s17 }
   0x2   :  { %11 = vsyncpa [#allocation4], 0  ;;  %s433_s18 = smov [#allocation5]   ;;  %s16_s22 = sshll.u32 %s483_s0, 4  ;;  %s17_s22 = int_to_ptr.hbm [resolvable:$true] %s16_s22 }
   0x3   :  { %s32_s19 = sshll.u32 %s433_s18, 4  ;;  %s434_s23 = smov [#allocation2]   ;;  %s33_s19 = int_to_ptr.vmem [resolvable:$true] %s32_s19 }
   0x4   :  { %35 = dma.hbm_to_vmem [thread:$0]  %s31_s17, 32, %s33_s19, [#allocation6]  }
   0x5   :  { %s18_s24 = sshll.u32 %s434_s23, 4  ;;  %s435_s25 = smov 64   ;;  %s19_s24 = int_to_ptr.vmem [resolvable:$true] %s18_s24 }
   0x6   :  { %s436_s26 = smov 4   ;;  %s40_s1 = sshll.u32 %s485_s2, 4  ;;  %s41_s1 = int_to_ptr.hbm [resolvable:$true] %s40_s1 }
   0x7   :  { %24 = dma.hbm_to_vmem [thread:$0]  %s17_s22, 256, %s19_s24, [#allocation3], %s435_s25, %s435_s25, %s436_s26  }
   0x8   :  { %s437_s29 = smov [#allocation7]  }
   0x9   :  { %s42_s30 = sshll.u32 %s437_s29, 4  ;;  %s43_s30 = int_to_ptr.vmem [resolvable:$true] %s42_s30 }
   0xa   :  { %48 = dma.hbm_to_vmem [thread:$0]  %s41_s1, 1024, %s43_s30, [#allocation6], %s435_s25, %s435_s25, %s436_s26  }
   0xb   :  { %427 = dma.done.wait [#allocation3], 256  }
   0xc   :  { %428 = vsyncadd [#allocation3], 4294967040 }
   0xd   :  { %429 = dma.done.wait [#allocation6], 1056  }
   0xe   :  { %430 = vsyncadd [#allocation6], 4294966240  ;;  %v310_v0 = vld [vmem:[#allocation7 + $0x38] sm:$0xff]  ;;  %v309_v1 = vld [vmem:[#allocation7 + $0x30] sm:$0xff]  ;;  %v197_v31 = vlaneseq  ;;  %vm207_vm0 = vcmask 130112   ;;  %vm212_vm1 = vcmask 1041409  }
   0xf   :  { %143 = vmatpush.bf16.msra.mxu0 %v310_v0  ;;  %311 = vmatpush.bf16.msra.mxu1 %v310_v0  ;;  %v308_v2 = vld [vmem:[#allocation7 + $0x28] sm:$0xff]  ;;  %v307_v3 = vld [vmem:[#allocation7 + $0x20] sm:$0xff]  ;;  %v306_v4 = vld [vmem:[#allocation7 + $0x18] sm:$0xff]  ;;  %vm216_vm3 = vcmask 123904   ;;  %v438_v52 = vmov 0.0   ;;  %s250_s8 = sshll.u32 %s487_s4, 4  ;;  %s251_s8 = int_to_ptr.hbm [resolvable:$true] %s250_s8 }
  0x10   :  { %v305_v5 = vld [vmem:[#allocation7 + $0x10] sm:$0xff]  ;;  %v304_v6 = vld [vmem:[#allocation7 + $0x8] sm:$0xff]  ;;  %v303_v7 = vld [vmem:[#allocation7] sm:$0xff]  ;;  %v198_v34 = vand.u32 127, %v197_v31  ;;  %241 = vst [vmem:[#allocation8] sm:$0x3] %v438_v52 }
  0x11   :  { %v301_v8 = vld [vmem:[#allocation2] sm:$0xff]  ;;  %v302_v9 = vld [vmem:[#allocation2 + $0x8] sm:$0xff]  ;;  %v162_v10 = vld [vmem:[#allocation5] sm:$0x3] }
  0x12   :  { %v164_v11 = vrot.slane %v162_v10, 1  ;;  %v165_v12 = vperm.slane %v162_v10, 0  ;;  %v326_v18 = vld [vmem:[%s486_s3] ss:$0 sm:$0xff]  ;;  %v205_v35 = vadd.s32 4294967288, %v198_v34  ;;  %vm199_vm2 = vcmp.lt.s32.totalorder %v198_v34, 8 }
  0x13   :  { %144 = vmatpush.bf16.msra.mxu0 %v309_v1  ;;  %312 = vmatpush.bf16.msra.mxu1 %v309_v1  ;;  %s439_s3 = smov [#allocation8]  }
  0x14   :  { %v166_v13 = vperm.slane %v164_v11, 0  ;;  %s248_s5 = sshll.u32 %s439_s3, 4  ;;  %s249_s5 = int_to_ptr.vmem [resolvable:$true] %s248_s5 }
  0x17   :  { %145 = vmatpush.bf16.msra.mxu0 %v308_v2  ;;  %313 = vmatpush.bf16.msra.mxu1 %v308_v2 }
  0x1b   :  { %146 = vmatpush.bf16.msra.mxu0 %v307_v3  ;;  %314 = vmatpush.bf16.msra.mxu1 %v307_v3 }
  0x1f   :  { %147 = vmatpush.bf16.msra.mxu0 %v306_v4  ;;  %315 = vmatpush.bf16.msra.mxu1 %v306_v4 }
  0x23   :  { %148 = vmatpush.bf16.msra.mxu0 %v305_v5  ;;  %316 = vmatpush.bf16.msra.mxu1 %v305_v5 }
  0x27   :  { %149 = vmatpush.bf16.msra.mxu0 %v304_v6  ;;  %317 = vmatpush.bf16.msra.mxu1 %v304_v6 }
  0x2b   :  { %150 = vmatpush.bf16.msra.mxu0 %v303_v7  ;;  %318 = vmatpush.bf16.msra.mxu1 %v303_v7 }
  0x2e   :  { %151 = vmatmul.bf16.vlgmr.msra.gmra.mxu0 %v301_v8  ;;  %156 = vmatmul.bf16.vlgmr.msra.gmra.mxu1 %v302_v9 }
  0xab   :  { %v152_v14 = vpop.f32.mrf.mxu0  ;;  %v157_v15 = vpop.f32.mrf.mxu1 }
  0xac   :  { %v169_v16 = vadd.f32 %v165_v12, %v152_v14  ;;  %v171_v17 = vadd.f32 %v166_v13, %v157_v15 }
  0xae   :  { %v173_v19 = vmax.f32 %v169_v16, 0.0  ;;  %v175_v20 = vmax.f32 %v171_v17, 0.0 }
  0xb0   :  { %v183_v21 = vmul.f32 %v326_v18, %v175_v20  ;;  %v181_v22 = vmul.f32 %v326_v18, %v173_v19 }
  0xb2   :  { %189 = vadd.xlane.f32.xlu1 %v183_v21  ;;  %185 = vadd.xlane.f32.xlu0 %v181_v22 }
  0xb3   :  { %v154_v23 = vpop.f32.mrf.mxu0  ;;  %v159_v24 = vpop.f32.mrf.mxu1 }
  0xb4   :  { %v170_v25 = vadd.f32 %v165_v12, %v154_v23  ;;  %v172_v26 = vadd.f32 %v166_v13, %v159_v24 }
  0xb6   :  { %v174_v27 = vmax.f32 %v170_v25, 0.0  ;;  %v176_v28 = vmax.f32 %v172_v26, 0.0 }
  0xb8   :  { %v184_v29 = vmul.f32 %v326_v18, %v176_v28  ;;  %v182_v30 = vmul.f32 %v326_v18, %v174_v27 }
  0xba   :  { %191 = vadd.xlane.f32.xlu1 %v184_v29  ;;  %187 = vadd.xlane.f32.xlu0 %v182_v30 }
 0x125   :  { %v190_v32 = vpop.xlane.xlu1 %189  ;;  %v186_v33 = vpop.xlane.xlu0 %185 }
 0x126   :  { %v209_v38 = vperm.slane %v190_v32, %v198_v34  ;;  %v204_v39 = vperm.slane %v186_v33, %v198_v34 }
 0x12d   :  { %v192_v36 = vpop.xlane.xlu1 %191  ;;  %v188_v37 = vpop.xlane.xlu0 %187 }
 0x12e   :  { %v210_v40 = vperm.slane %v192_v36, %v205_v35  ;;  %v206_v41 = vperm.slane %v188_v37, %v205_v35 }
 0x130   :  { %v208_v42 = vsel %vm207_vm0, %v206_v41, %v204_v39  ;;  %v211_v43 = vsel %vm207_vm0, %v210_v40, %v209_v38 }
 0x131   :  { %v213_v44 = vsel %vm212_vm1, %v211_v43, %v208_v42 }
 0x132   :  { %v215_v45 = vsel %vm199_vm2, %v213_v44, -1e+30 }
 0x133   :  { %v217_v46 = vsel %vm216_vm3, %v215_v45, -inf }
 0x134   :  { %218 = vmax.xlane.f32.xlu2 %v217_v46 }
 0x1a7   :  { %v219_v47 = vpop.xlane.xlu2 %218 }
 0x1a8   :  { %v220_v48 = vsub.f32 %v215_v45, %v219_v47 }
 0x1aa   :  { %v221_v49 = vmul.f32 1.442695, %v220_v48 }
 0x1ac   :  { %327 = vpow2.f32 %v221_v49 }
 0x1b2   :  { %v328_v50 = vpop.eup %327 }
 0x1b3   :  { %v223_v51 = vsel %vm216_vm3, %v328_v50, 0.0 }
 0x1b4   :  { %224 = vadd.xlane.f32.xlu2 %v223_v51 }
 0x227   :  { %v225_v53 = vpop.xlane.xlu2 %224 }
 0x228   :  { %329 = vrcp.f32 %v225_v53  ;;  %v237_v57 = vand.u32 2147483648, %v225_v53  ;;  %v235_v59 = vand.u32 2147483647, %v225_v53  ;;  %vm231_vm5 = vweird.f32 %v225_v53 }
 0x22a   :  { %v238_v61 = vor.u32 1.1754944e-38, %v237_v57  ;;  %vm236_vm7 = vcmp.eq.f32.partialorder %v235_v59, 8.507059e+37 }
 0x22e   :  { %v330_v54 = vpop.eup %329 }
 0x22f   :  { %v227_v55 = vmul.f32 %v330_v54, %v225_v53  ;;  %vm232_vm4 = vweird.f32 %v330_v54 }
 0x230   :  { %vm233_vm6 = vmor %vm231_vm5, %vm232_vm4 }
 0x231   :  { %v228_v56 = vsub.f32 1.0, %v227_v55 }
 0x233   :  { %v229_v58 = vmul.f32 %v330_v54, %v228_v56 }
 0x235   :  { %v230_v60 = vadd.f32 %v330_v54, %v229_v58 }
 0x237   :  { %v234_v62 = vsel %vm233_vm6, %v330_v54, %v230_v60 }
 0x238   :  { %v239_v63 = vsel %vm236_vm7, %v238_v61, %v234_v62 }
 0x239   :  { %v240_v0 = vmul.f32 %v328_v50, %v239_v63 }
 0x23b   :  { %242 = vst.msk [vmem:[#allocation8] sm:$0x3] %vm216_vm3, %v240_v0 }
 0x23c   :  { %253 = dma.vmem_to_hbm [thread:$0]  %s249_s5, 32, %s251_s8, [#allocation4]  }
 0x23d   :  { %431 = dma.done.wait [#allocation4], 32  }
 0x23e   :  { %432 = vsyncadd [#allocation4], 4294967264 }
 0x23f   :  { %258 = vsyncpa [#allocation3], 1 }
 0x240   :  { %259 = vsyncpa [#allocation6], 1 }
 0x241   :  { %260 = vsyncpa [#allocation4], 1 }

</bundles_post_ra>
